<compile_context>
chip_gen: v7x
topology: tpu7x:2x2x1
jax: 0.10.0
libtpu: 0.0.40
codegen_flags: <defaults>
</compile_context>

<pallas_src>
import functools

import jax
import jax.numpy as jnp
from jax.experimental import pallas as pl
from jax.experimental.pallas import tpu as pltpu  # noqa: F401  (TPU backend)

EPS = 1e-5


def _resblock_kernel(x_ref, w1_ref, w2_ref, p_ref, o_ref, *, n_real, mxu_dtype):
    x0 = x_ref[...].astype(jnp.float32)                  # (Np, Wp), f32 BN math

    # Packed row parameters: one aligned (8, Wp) DMA, static sublane slices.
    g1 = p_ref[0:1, :]
    beta1 = p_ref[1:2, :]
    g2 = p_ref[2:3, :]
    beta2 = p_ref[3:4, :]
    b2 = p_ref[4:5, :]

    n_pad = x0.shape[0]
    inv_n = jnp.float32(1.0 / n_real)

    # Row-validity mask is only needed when the batch axis was padded; it keeps
    # padded rows out of the second BatchNorm's statistics.
    if n_pad != n_real:
        rows = jax.lax.broadcasted_iota(jnp.int32, (n_pad, 1), 0)
        row_mask = (rows < n_real).astype(jnp.float32)
    else:
        row_mask = None

    def batchnorm(v, gamma, beta):
        # One-pass stats: both reductions issue back to back on the XLU.
        s = jnp.sum(v, axis=0, keepdims=True)
        sq = jnp.sum(v * v, axis=0, keepdims=True)
        mean = s * inv_n
        var = jnp.maximum(sq * inv_n - mean * mean, 0.0)  # clamp cancellation
        return (v - mean) * jax.lax.rsqrt(var + EPS) * gamma + beta

    # ---- BN1 -> ReLU -> fc1 (no bias) ----
    a1 = jnp.maximum(batchnorm(x0, g1, beta1), 0.0)
    if row_mask is not None:
        a1 = a1 * row_mask
    h = jax.lax.dot_general(
        a1.astype(mxu_dtype), w1_ref[...],
        (((1,), (1,)), ((), ())),                         # x @ W1^T, no transpose op
        preferred_element_type=jnp.float32)

    # ---- BN2 -> ReLU -> fc2 (+bias) ----
    a2 = jnp.maximum(batchnorm(h, g2, beta2), 0.0)
    y = jax.lax.dot_general(
        a2.astype(mxu_dtype), w2_ref[...],
        (((1,), (1,)), ((), ())),                         # x @ W2^T
        preferred_element_type=jnp.float32)
    y = y + b2

    # ---- skip connection ----
    o_ref[...] = (y + x0).astype(o_ref.dtype)


def resblock_forward(x, w1, w2, b2, g1, beta1, g2, beta2, *,
                     mxu_dtype=jnp.bfloat16):
    """x: (N, W). w1, w2: (W, W) PyTorch (out, in) layout. b2/g*/beta*: (W,)."""
    N, W = x.shape
    Wp = ((W + 127) // 128) * 128      # lane-dense feature dim
    Np = ((N + 7) // 8) * 8            # full f32 sublane tiles

    f32 = jnp.float32
    x_p = jnp.pad(x, ((0, Np - N), (0, Wp - W)))
    w1_p = jnp.pad(w1.astype(mxu_dtype), ((0, Wp - W), (0, Wp - W)))
    w2_p = jnp.pad(w2.astype(mxu_dtype), ((0, Wp - W), (0, Wp - W)))

    # Pack the five row parameters into one sublane-aligned (8, Wp) slab.
    rows = jnp.stack([g1, beta1, g2, beta2, b2]).astype(f32)          # (5, W)
    params = jnp.pad(rows, ((0, 3), (0, Wp - W)))                     # (8, Wp)

    full = lambda shape: pl.BlockSpec(shape, lambda: (0,) * len(shape))
    kernel = functools.partial(_resblock_kernel, n_real=N, mxu_dtype=mxu_dtype)

    out_p = pl.pallas_call(
        kernel,
        out_shape=jax.ShapeDtypeStruct((Np, Wp), x.dtype),
        grid=(),
        in_specs=[
            full((Np, Wp)),            # padded x
            full((Wp, Wp)),            # W1 (out, in), bf16
            full((Wp, Wp)),            # W2 (out, in), bf16
            full((8, Wp)),             # packed row params
        ],
        out_specs=full((Np, Wp)),
        input_output_aliases={0: 0},   # reuse padded-x HBM buffer for the output
    )(x_p, w1_p, w2_p, params)
    return out_p[:N, :W]


def resblock_ref(x, w1, w2, b2, g1, beta1, g2, beta2, mxu_dtype=None):
    """Pure-JAX reference matching PyTorch training-mode forward.

    If mxu_dtype is given, the two matmuls use operands cast to that dtype
    (matching the kernel's MXU precision) with f32 accumulation.
    """
    x0 = x.astype(jnp.float32)

    def bn(v, g, b):
        m = jnp.mean(v, axis=0)
        var = jnp.mean((v - m) ** 2, axis=0)
        return (v - m) / jnp.sqrt(var + EPS) * g + b

    def mm(a, w):
        if mxu_dtype is not None:
            a = a.astype(mxu_dtype)
            w = w.astype(mxu_dtype)
        return jnp.dot(a, w.T, preferred_element_type=jnp.float32)

    h = jnp.maximum(bn(x0, g1, beta1), 0.0)
    h = mm(h, w1)
    h = jnp.maximum(bn(h, g2, beta2), 0.0)
    h = mm(h, w2) + b2
    return (h + x0).astype(x.dtype)


if __name__ == "__main__":
    key = jax.random.PRNGKey(0)
    N, W = 8, 32                        # batch=8, width=32
    k = jax.random.split(key, 4)

    x = jax.random.normal(k[0], (N, W), dtype=jnp.float32)

    # PyTorch-style uniform init bound 1/sqrt(fan_in).
    bound = 1.0 / (W ** 0.5)
    w1 = jax.random.uniform(k[1], (W, W), jnp.float32, -bound, bound)
    w2 = jax.random.uniform(k[2], (W, W), jnp.float32, -bound, bound)
    b2 = jax.random.uniform(k[3], (W,), jnp.float32, -bound, bound)
    # BatchNorm affine params, perturbed so the affine path is exercised.
    g1 = jnp.ones((W,), jnp.float32) + 0.1
    beta1 = jnp.full((W,), 0.05, jnp.float32)
    g2 = jnp.ones((W,), jnp.float32) - 0.1
    beta2 = jnp.full((W,), -0.05, jnp.float32)

    out = resblock_forward(x, w1, w2, b2, g1, beta1, g2, beta2)
    out = jax.block_until_ready(out)
    assert out.shape == (N, W)

    # Exact-semantics (f32) PyTorch-parity reference; loose tolerance accounts
    # for the intentional bf16 MXU operands in the kernel.
    ref_f32 = resblock_ref(x, w1, w2, b2, g1, beta1, g2, beta2)
    assert jnp.allclose(out, ref_f32, atol=5e-2, rtol=5e-2), "mismatch vs f32 ref"

    # Tighter check against a reference using the same bf16 matmul precision.
    ref_bf16 = resblock_ref(x, w1, w2, b2, g1, beta1, g2, beta2,
                            mxu_dtype=jnp.bfloat16)
    assert jnp.allclose(out, ref_bf16, atol=1e-2, rtol=1e-2), "mismatch vs bf16 ref"

    print("KERNEL_OK")
</pallas_src>

<mosaic_0001>
module attributes {stable_mosaic.version = 11 : i64} {
  func.func @_resblock_kernel(%arg0: memref<8x128xf32, #tpu.memory_space<vmem>>, %arg1: memref<128x128xbf16, #tpu.memory_space<vmem>>, %arg2: memref<128x128xbf16, #tpu.memory_space<vmem>>, %arg3: memref<8x128xf32, #tpu.memory_space<vmem>>, %arg4: memref<8x128xf32, #tpu.memory_space<vmem>>) attributes {dimension_semantics = [], scalar_prefetch = 0 : i64, scratch_operands = 0 : i64, tpu.core_type = #tpu.core_type<tc>} {
    %c0 = arith.constant 0 : index
    %c0_0 = arith.constant 0 : index
    %0 = vector.load %arg0[%c0, %c0_0] : memref<8x128xf32, #tpu.memory_space<vmem>>, vector<8x128xf32>
    %c0_1 = arith.constant 0 : index
    %c0_2 = arith.constant 0 : index
    %1 = vector.load %arg3[%c0_1, %c0_2] : memref<8x128xf32, #tpu.memory_space<vmem>>, vector<1x128xf32>
    %c1 = arith.constant 1 : index
    %c0_3 = arith.constant 0 : index
    %2 = vector.load %arg3[%c1, %c0_3] : memref<8x128xf32, #tpu.memory_space<vmem>>, vector<1x128xf32>
    %c2 = arith.constant 2 : index
    %c0_4 = arith.constant 0 : index
    %3 = vector.load %arg3[%c2, %c0_4] : memref<8x128xf32, #tpu.memory_space<vmem>>, vector<1x128xf32>
    %c3 = arith.constant 3 : index
    %c0_5 = arith.constant 0 : index
    %4 = vector.load %arg3[%c3, %c0_5] : memref<8x128xf32, #tpu.memory_space<vmem>>, vector<1x128xf32>
    %c4 = arith.constant 4 : index
    %c0_6 = arith.constant 0 : index
    %5 = vector.load %arg3[%c4, %c0_6] : memref<8x128xf32, #tpu.memory_space<vmem>>, vector<1x128xf32>
    %cst = arith.constant dense<0.000000e+00> : vector<128xf32>
    %6 = vector.multi_reduction <add>, %0, %cst [0] : vector<8x128xf32> to vector<128xf32>
    %7 = vector.shape_cast %6 : vector<128xf32> to vector<1x128xf32>
    %8 = arith.mulf %0, %0 : vector<8x128xf32>
    %cst_7 = arith.constant dense<0.000000e+00> : vector<128xf32>
    %9 = vector.multi_reduction <add>, %8, %cst_7 [0] : vector<8x128xf32> to vector<128xf32>
    %10 = vector.shape_cast %9 : vector<128xf32> to vector<1x128xf32>
    %cst_8 = arith.constant 1.250000e-01 : f32
    %11 = vector.broadcast %cst_8 : f32 to vector<1x128xf32>
    %12 = arith.mulf %7, %11 : vector<1x128xf32>
    %cst_9 = arith.constant 1.250000e-01 : f32
    %13 = vector.broadcast %cst_9 : f32 to vector<1x128xf32>
    %14 = arith.mulf %10, %13 : vector<1x128xf32>
    %15 = arith.mulf %12, %12 : vector<1x128xf32>
    %16 = arith.subf %14, %15 : vector<1x128xf32>
    %cst_10 = arith.constant 0.000000e+00 : f32
    %17 = vector.broadcast %cst_10 : f32 to vector<1x128xf32>
    %18 = arith.maximumf %16, %17 : vector<1x128xf32>
    %19 = vector.broadcast %12 : vector<1x128xf32> to vector<8x128xf32>
    %20 = arith.subf %0, %19 : vector<8x128xf32>
    %cst_11 = arith.constant 9.99999974E-6 : f32
    %21 = vector.broadcast %cst_11 : f32 to vector<1x128xf32>
    %22 = arith.addf %18, %21 : vector<1x128xf32>
    %23 = math.rsqrt %22 : vector<1x128xf32>
    %24 = vector.broadcast %23 : vector<1x128xf32> to vector<8x128xf32>
    %25 = arith.mulf %20, %24 : vector<8x128xf32>
    %26 = vector.broadcast %1 : vector<1x128xf32> to vector<8x128xf32>
    %27 = arith.mulf %25, %26 : vector<8x128xf32>
    %28 = vector.broadcast %2 : vector<1x128xf32> to vector<8x128xf32>
    %29 = arith.addf %27, %28 : vector<8x128xf32>
    %cst_12 = arith.constant 0.000000e+00 : f32
    %30 = vector.broadcast %cst_12 : f32 to vector<8x128xf32>
    %31 = arith.maximumf %29, %30 : vector<8x128xf32>
    %32 = arith.truncf %31 : vector<8x128xf32> to vector<8x128xbf16>
    %c0_13 = arith.constant 0 : index
    %c0_14 = arith.constant 0 : index
    %33 = vector.load %arg1[%c0_13, %c0_14] : memref<128x128xbf16, #tpu.memory_space<vmem>>, vector<128x128xbf16>
    %cst_15 = arith.constant dense<0.000000e+00> : vector<8x128xf32>
    %34 = tpu.matmul %32, %33, %cst_15 {dimension_numbers = #tpu.dot_dimension_numbers<[1], [1], [0], [0], [0, 0, 1, 0], [], []>} : vector<8x128xbf16>, vector<128x128xbf16>, vector<8x128xf32> -> vector<8x128xf32>
    %cst_16 = arith.constant dense<0.000000e+00> : vector<128xf32>
    %35 = vector.multi_reduction <add>, %34, %cst_16 [0] : vector<8x128xf32> to vector<128xf32>
    %36 = vector.shape_cast %35 : vector<128xf32> to vector<1x128xf32>
    %37 = arith.mulf %34, %34 : vector<8x128xf32>
    %cst_17 = arith.constant dense<0.000000e+00> : vector<128xf32>
    %38 = vector.multi_reduction <add>, %37, %cst_17 [0] : vector<8x128xf32> to vector<128xf32>
    %39 = vector.shape_cast %38 : vector<128xf32> to vector<1x128xf32>
    %cst_18 = arith.constant 1.250000e-01 : f32
    %40 = vector.broadcast %cst_18 : f32 to vector<1x128xf32>
    %41 = arith.mulf %36, %40 : vector<1x128xf32>
    %cst_19 = arith.constant 1.250000e-01 : f32
    %42 = vector.broadcast %cst_19 : f32 to vector<1x128xf32>
    %43 = arith.mulf %39, %42 : vector<1x128xf32>
    %44 = arith.mulf %41, %41 : vector<1x128xf32>
    %45 = arith.subf %43, %44 : vector<1x128xf32>
    %cst_20 = arith.constant 0.000000e+00 : f32
    %46 = vector.broadcast %cst_20 : f32 to vector<1x128xf32>
    %47 = arith.maximumf %45, %46 : vector<1x128xf32>
    %48 = vector.broadcast %41 : vector<1x128xf32> to vector<8x128xf32>
    %49 = arith.subf %34, %48 : vector<8x128xf32>
    %cst_21 = arith.constant 9.99999974E-6 : f32
    %50 = vector.broadcast %cst_21 : f32 to vector<1x128xf32>
    %51 = arith.addf %47, %50 : vector<1x128xf32>
    %52 = math.rsqrt %51 : vector<1x128xf32>
    %53 = vector.broadcast %52 : vector<1x128xf32> to vector<8x128xf32>
    %54 = arith.mulf %49, %53 : vector<8x128xf32>
    %55 = vector.broadcast %3 : vector<1x128xf32> to vector<8x128xf32>
    %56 = arith.mulf %54, %55 : vector<8x128xf32>
    %57 = vector.broadcast %4 : vector<1x128xf32> to vector<8x128xf32>
    %58 = arith.addf %56, %57 : vector<8x128xf32>
    %cst_22 = arith.constant 0.000000e+00 : f32
    %59 = vector.broadcast %cst_22 : f32 to vector<8x128xf32>
    %60 = arith.maximumf %58, %59 : vector<8x128xf32>
    %61 = arith.truncf %60 : vector<8x128xf32> to vector<8x128xbf16>
    %c0_23 = arith.constant 0 : index
    %c0_24 = arith.constant 0 : index
    %62 = vector.load %arg2[%c0_23, %c0_24] : memref<128x128xbf16, #tpu.memory_space<vmem>>, vector<128x128xbf16>
    %cst_25 = arith.constant dense<0.000000e+00> : vector<8x128xf32>
    %63 = tpu.matmul %61, %62, %cst_25 {dimension_numbers = #tpu.dot_dimension_numbers<[1], [1], [0], [0], [0, 0, 1, 0], [], []>} : vector<8x128xbf16>, vector<128x128xbf16>, vector<8x128xf32> -> vector<8x128xf32>
    %64 = vector.broadcast %5 : vector<1x128xf32> to vector<8x128xf32>
    %65 = arith.addf %63, %64 : vector<8x128xf32>
    %66 = arith.addf %65, %0 : vector<8x128xf32>
    %c0_26 = arith.constant 0 : index
    %c0_27 = arith.constant 0 : index
    %67 = vector.load %arg4[%c0_26, %c0_27] : memref<8x128xf32, #tpu.memory_space<vmem>>, vector<8x128xf32>
    tpu.vector_store %arg4[%c0_26, %c0_27], %66 {strides = array<i32>} : memref<8x128xf32, #tpu.memory_space<vmem>>, vector<8x128xf32>,
    return
  }
}

</mosaic_0001>

<bundles_post_ra>
// kernel: tpu_custom_call.1
= control target key start
LH: loop header
LB: loop body
LE: loop exit
PB: predicated region body
PF: predicated region fallthrough
CT: control target
= control target key end

     0   :  { %9 = vsyncpa [#allocation3], 0  ;;  %s691_s0 = inlined_call_operand.hbm [shape: f32[8,128], index: 0, kind: input, shape index: {}, may-alias: {0,4}]   ;;  %s692_s1 = inlined_call_operand.hbm [shape: bf16[128,128], index: 1, kind: input, shape index: {}]   ;;  %s693_s2 = inlined_call_operand.hbm [shape: bf16[128,128], index: 2, kind: input, shape index: {}]   ;;  %s694_s3 = inlined_call_operand.vmem [shape: f32[8,128], index: 3, kind: input, shape index: {}]   ;;  %s695_s4 = inlined_call_operand.hbm [shape: f32[8,128], index: 4, kind: output, shape index: {}, may-alias: {0,4}]  }
   0x1   :  { %10 = vsyncpa [#allocation6], 0 }
   0x2   :  { %11 = vsyncpa [#allocation4], 0  ;;  %s563_s15 = smov [#allocation5]   ;;  %s469_s19 = scalar_lea.hbm %s692_s1, 1024 }
   0x3   :  { %s27_s16 = sshll.u32 %s563_s15, 4  ;;  %p470_p0 = scmp.ne.s32.totalorder %s692_s1, %s469_s19  ;;  %s28_s16 = int_to_ptr.vmem [resolvable:$true] %s27_s16 }
   0x4   :  { %p473_p1 = scmp.lt.u32.totalorder %s469_s19, %s692_s1 }
   0x6   :  { %p475_p2 = pnand %p473_p1, %p470_p0 }
   0x8   :  { %478 = shalt.err (!%p475_p2)
}
   0x9   :  { %s479_s24 = scalar_lea.vmem %s28_s16, 1024  ;;  %p484_p4 = scmp.lt.s32.totalorder %s28_s16, %s28_s16 }
   0xa   :  { %p480_p3 = scmp.ne.s32.totalorder %s28_s16, %s479_s24  ;;  %p485_p5 = scmp.lt.s32.totalorder %s479_s24, %s479_s24 }
   0xc   :  { %p486_p6 = por %p485_p5, %p484_p4 }
   0xe   :  { %p487_p7 = pnand %p486_p6, %p480_p3 }
  0x10   :  { %490 = shalt.err (!%p487_p7)
}
  0x11   :  { %s564_s25 = smov 64   ;;  %s565_s26 = smov 4  }
  0x12   :  { %33 = dma.hbm_to_vmem [thread:$0]  %s692_s1, 1024, %s28_s16, [#allocation6], %s564_s25, %s564_s25, %s565_s26  }
  0x13   :  { %s566_s29 = smov [#allocation2]   ;;  %s567_s5 = smov [#allocation7]  }
  0x14   :  { %s18_s30 = sshll.u32 %s566_s29, 4  ;;  %s39_s6 = sshll.u32 %s567_s5, 4  ;;  %s19_s30 = int_to_ptr.vmem [resolvable:$true] %s18_s30  ;;  %s40_s6 = int_to_ptr.vmem [resolvable:$true] %s39_s6 }
  0x15   :  { %s491_s9 = scalar_lea.hbm %s691_s0, 128 }
  0x16   :  { %p492_p8 = scmp.ne.s32.totalorder %s691_s0, %s491_s9  ;;  %p495_p9 = scmp.lt.u32.totalorder %s491_s9, %s691_s0 }
  0x18   :  { %p497_p10 = pnand %p495_p9, %p492_p8 }
  0x1a   :  { %500 = shalt.err (!%p497_p10)
}
  0x1b   :  { %s501_s1 = scalar_lea.vmem %s19_s30, 128  ;;  %p506_p12 = scmp.lt.s32.totalorder %s19_s30, %s19_s30 }
  0x1c   :  { %p502_p11 = scmp.ne.s32.totalorder %s19_s30, %s501_s1  ;;  %p507_p13 = scmp.lt.s32.totalorder %s501_s1, %s501_s1 }
  0x1e   :  { %p508_p0 = por %p507_p13, %p506_p12 }
  0x20   :  { %p509_p1 = pnand %p508_p0, %p502_p11 }
  0x22   :  { %512 = shalt.err (!%p509_p1)
}
  0x23   :  { %21 = dma.hbm_to_vmem [thread:$0]  %s691_s0, 128, %s19_s30, [#allocation3]  }
  0x24   :  { %s513_s18 = scalar_lea.hbm %s693_s2, 1024 }
  0x25   :  { %p514_p2 = scmp.ne.s32.totalorder %s693_s2, %s513_s18  ;;  %p517_p3 = scmp.lt.u32.totalorder %s513_s18, %s693_s2 }
  0x27   :  { %p519_p4 = pnand %p517_p3, %p514_p2 }
  0x29   :  { %522 = shalt.err (!%p519_p4)
}
  0x2a   :  { %s523_s23 = scalar_lea.vmem %s40_s6, 1024  ;;  %p528_p6 = scmp.lt.s32.totalorder %s40_s6, %s40_s6 }
  0x2b   :  { %p524_p5 = scmp.ne.s32.totalorder %s40_s6, %s523_s23  ;;  %p529_p7 = scmp.lt.s32.totalorder %s523_s23, %s523_s23 }
  0x2d   :  { %p530_p8 = por %p529_p7, %p528_p6 }
  0x2f   :  { %p531_p9 = pnand %p530_p8, %p524_p5 }
  0x31   :  { %534 = shalt.err (!%p531_p9)
}
  0x32   :  { %45 = dma.hbm_to_vmem [thread:$0]  %s693_s2, 1024, %s40_s6, [#allocation6], %s564_s25, %s564_s25, %s565_s26  }
  0x33   :  { %557 = dma.done.wait [#allocation3], 128  }
  0x34   :  { %558 = vsyncadd [#allocation3], 4294967168 }
  0x35   :  { %559 = dma.done.wait [#allocation6], 2048  }
  0x36   :  { %560 = vsyncadd [#allocation6], 4294965248  ;;  %v568_v0 = vmov 0.0   ;;  %vm569_vm0 = vmmov 0   ;;  %v449_v1 = vld [vmem:[#allocation5] sm:$0xff]   ;;  %v450_v2 = vld [vmem:[#allocation5 + $0x8] sm:$0xff]  }
  0x37   :  { %401 = vmatprep.subr.bf16.mxu0 %v568_v0  ;;  %417 = vmatprep.mubr.msk.bf16.mxu0 %vm569_vm0, %v568_v0  ;;  %v643_v3 = vld [vmem:[#allocation2] sm:$0xff]  ;;  %v457_v6 = vld [vmem:[#allocation7] sm:$0xff]   ;;  %v451_v9 = vld [vmem:[#allocation5 + $0x10] sm:$0xff]   ;;  %s570_s8 = smov [#allocation8]  }
  0x38   :  { %421 = vmatprep.subr.bf16.mxu1 %v568_v0  ;;  %437 = vmatprep.mubr.msk.bf16.mxu1 %vm569_vm0, %v568_v0  ;;  %v64_v4 = vrot.slane %v643_v3, 4  ;;  %v70_v5 = vmul.f32 %v643_v3, %v643_v3  ;;  %v458_v14 = vld [vmem:[#allocation7 + $0x8] sm:$0xff]   ;;  %v452_v21 = vld [vmem:[#allocation5 + $0x18] sm:$0xff]   ;;  %v459_v24 = vld [vmem:[#allocation7 + $0x10] sm:$0xff]   ;;  %s352_s9 = sshll.u32 %s570_s8, 4  ;;  %s353_s9 = int_to_ptr.vmem [resolvable:$true] %s352_s9 }
  0x39   :  { %402 = vmatpush3.bf16.xpose.msra.mxu0 %v449_v1  ;;  %422 = vmatpush3.bf16.xpose.msra.mxu1 %v457_v6  ;;  %v453_v28 = vld [vmem:[#allocation5 + $0x20] sm:$0xff]   ;;  %v454_v29 = vld [vmem:[#allocation5 + $0x28] sm:$0xff]   ;;  %v455_v33 = vld [vmem:[#allocation5 + $0x30] sm:$0xff]   ;;  %s535_s10 = scalar_lea.vmem %s353_s9, 128  ;;  %p540_p11 = scmp.lt.s32.totalorder %s353_s9, %s353_s9 }
  0x3a   :  { %403 = vmatprep.subr.bf16.mxu0 %v568_v0  ;;  %v65_v7 = vadd.f32 %v64_v4, %v643_v3  ;;  %v71_v8 = vrot.slane %v70_v5, 4  ;;  %423 = vmatprep.subr.bf16.mxu1 %v568_v0  ;;  %v362_v34 = vld [vmem:[%s694_s3] ss:$0 sm:$0xff]  ;;  %v363_v36 = vld [vmem:[%s694_s3 + $0x1] ss:$0 sm:$0xff]  ;;  %v456_v38 = vld [vmem:[#allocation5 + $0x38] sm:$0xff]   ;;  %p536_p10 = scmp.ne.s32.totalorder %s353_s9, %s535_s10  ;;  %p541_p12 = scmp.lt.s32.totalorder %s535_s10, %s535_s10 }
  0x3b   :  { %v460_v41 = vld [vmem:[#allocation7 + $0x18] sm:$0xff]   ;;  %v461_v42 = vld [vmem:[#allocation7 + $0x20] sm:$0xff]   ;;  %v462_v43 = vld [vmem:[#allocation7 + $0x28] sm:$0xff]  }
  0x3c   :  { %v66_v10 = vrot.slane %v65_v7, 2  ;;  %v72_v11 = vadd.f32 %v71_v8, %v70_v5  ;;  %v463_v44 = vld [vmem:[#allocation7 + $0x30] sm:$0xff]   ;;  %v464_v45 = vld [vmem:[#allocation7 + $0x38] sm:$0xff]   ;;  %p542_p13 = por %p541_p12, %p540_p11 }
  0x3d   :  { %v372_v8 = vld [vmem:[%s694_s3 + $0x2] ss:$0 sm:$0xff] }
  0x3e   :  { %v67_v12 = vadd.f32 %v66_v10, %v65_v7  ;;  %v73_v13 = vrot.slane %v72_v11, 2  ;;  %v373_v10 = vld [vmem:[%s694_s3 + $0x3] ss:$0 sm:$0xff]  ;;  %p543_p0 = pnand %p542_p13, %p536_p10 }
  0x40   :  { %v68_v15 = vrot.slane %v67_v12, 1  ;;  %v74_v16 = vadd.f32 %v73_v13, %v72_v11 }
  0x41   :  { %404 = vmatpush3.bf16.xpose.msra.mxu0 %v450_v2  ;;  %424 = vmatpush3.bf16.xpose.msra.mxu1 %v458_v14 }
  0x42   :  { %405 = vmatprep.subr.bf16.mxu0 %v568_v0  ;;  %v69_v17 = vadd.f32 %v68_v15, %v67_v12  ;;  %v75_v18 = vrot.slane %v74_v16, 1  ;;  %425 = vmatprep.subr.bf16.mxu1 %v568_v0  ;;  %v374_v15 = vld [vmem:[%s694_s3 + $0x4] ss:$0 sm:$0xff] }
  0x44   :  { %v76_v19 = vadd.f32 %v75_v18, %v74_v16  ;;  %v77_v20 = vmul.f32 0.125, %v69_v17 }
  0x46   :  { %v78_v22 = vmul.f32 0.125, %v76_v19  ;;  %v79_v23 = vmul.f32 %v77_v20, %v77_v20  ;;  %v82_v30 = vsub.f32 %v643_v3, %v77_v20 }
  0x48   :  { %v80_v25 = vsub.f32 %v78_v22, %v79_v23 }
  0x49   :  { %406 = vmatpush3.bf16.xpose.msra.mxu0 %v451_v9  ;;  %426 = vmatpush3.bf16.xpose.msra.mxu1 %v459_v24 }
  0x4a   :  { %407 = vmatprep.subr.bf16.mxu0 %v568_v0  ;;  %v81_v26 = vmax.f32 %v80_v25, 0.0  ;;  %427 = vmatprep.subr.bf16.mxu1 %v568_v0 }
  0x4c   :  { %v83_v27 = vadd.f32 1e-05, %v81_v26 }
  0x4e   :  { %465 = vrsqrt.f32 %v83_v27 }
  0x51   :  { %408 = vmatpush3.bf16.xpose.msra.mxu0 %v452_v21  ;;  %428 = vmatpush3.bf16.xpose.msra.mxu1 %v460_v41 }
  0x52   :  { %409 = vmatprep.subr.bf16.mxu0 %v568_v0  ;;  %429 = vmatprep.subr.bf16.mxu1 %v568_v0 }
  0x58   :  { %v466_v31 = vpop.eup %465 }
  0x59   :  { %410 = vmatpush3.bf16.xpose.msra.mxu0 %v453_v28  ;;  %v85_v32 = vmul.f32 %v466_v31, %v82_v30  ;;  %430 = vmatpush3.bf16.xpose.msra.mxu1 %v461_v42 }
  0x5a   :  { %411 = vmatprep.subr.bf16.mxu0 %v568_v0  ;;  %431 = vmatprep.subr.bf16.mxu1 %v568_v0 }
  0x5b   :  { %v90_v35 = vmul.f32 %v362_v34, %v85_v32 }
  0x5d   :  { %v95_v37 = vadd.f32 %v363_v36, %v90_v35 }
  0x5f   :  { %v96_v39 = vmax.f32 %v95_v37, 0.0 }
  0x61   :  { %412 = vmatpush3.bf16.xpose.msra.mxu0 %v454_v29  ;;  %v97_v40 = vpack.c.bf16 %v96_v39, %v96_v39  ;;  %432 = vmatpush3.bf16.xpose.msra.mxu1 %v462_v43 }
  0x62   :  { %413 = vmatprep.subr.bf16.mxu0 %v568_v0  ;;  %433 = vmatprep.subr.bf16.mxu1 %v568_v0 }
  0x69   :  { %414 = vmatpush3.bf16.xpose.msra.mxu0 %v455_v33  ;;  %434 = vmatpush3.bf16.xpose.msra.mxu1 %v463_v44 }
  0x6a   :  { %415 = vmatprep.subr.bf16.mxu0 %v568_v0  ;;  %435 = vmatprep.subr.bf16.mxu1 %v568_v0 }
  0x71   :  { %416 = vmatpush3.bf16.xpose.msra.mxu0 %v456_v38  ;;  %436 = vmatpush3.bf16.xpose.msra.mxu1 %v464_v45 }
  0x78   :  { %418 = vmatmul.mubr.bf16.vlgmr.msra.gmra.mrb[0].mxu0 %v97_v40 }
 0x14b   :  { %v196_v46 = vpop.f32.mrb[0].mxu0 }
 0x14c   :  { %v202_v47 = vrot.slane %v196_v46, 4  ;;  %v208_v48 = vmul.f32 %v196_v46, %v196_v46  ;;  %v419_v49 = vpop.f32.mrb[1].mxu0 }
 0x14d   :  { %v199_v50 = vpop.f32.mrb[2].mxu0 }
 0x14e   :  { %v203_v51 = vadd.f32 %v202_v47, %v196_v46  ;;  %v209_v52 = vrot.slane %v208_v48, 4  ;;  %v420_v53 = vpop.f32.mrb[3].mxu0 }
 0x150   :  { %v204_v54 = vrot.slane %v203_v51, 2  ;;  %v210_v55 = vadd.f32 %v209_v52, %v208_v48 }
 0x152   :  { %v205_v56 = vadd.f32 %v204_v54, %v203_v51  ;;  %v211_v57 = vrot.slane %v210_v55, 2 }
 0x154   :  { %v206_v58 = vrot.slane %v205_v56, 1  ;;  %v212_v59 = vadd.f32 %v211_v57, %v210_v55 }
 0x156   :  { %v207_v60 = vadd.f32 %v206_v58, %v205_v56  ;;  %v213_v61 = vrot.slane %v212_v59, 1 }
 0x158   :  { %v214_v62 = vadd.f32 %v213_v61, %v212_v59  ;;  %v215_v63 = vmul.f32 0.125, %v207_v60 }
 0x15a   :  { %v216_v0 = vmul.f32 0.125, %v214_v62  ;;  %v217_v1 = vmul.f32 %v215_v63, %v215_v63  ;;  %v220_v6 = vsub.f32 %v196_v46, %v215_v63 }
 0x15c   :  { %v218_v2 = vsub.f32 %v216_v0, %v217_v1 }
 0x15e   :  { %v219_v4 = vmax.f32 %v218_v2, 0.0 }
 0x160   :  { %v221_v5 = vadd.f32 1e-05, %v219_v4 }
 0x162   :  { %467 = vrsqrt.f32 %v221_v5 }
 0x16c   :  { %v468_v7 = vpop.eup %467 }
 0x16d   :  { %v223_v9 = vmul.f32 %v468_v7, %v220_v6 }
 0x16f   :  { %v228_v11 = vmul.f32 %v372_v8, %v223_v9 }
 0x171   :  { %v233_v12 = vadd.f32 %v373_v10, %v228_v11 }
 0x173   :  { %v234_v13 = vmax.f32 %v233_v12, 0.0 }
 0x175   :  { %v235_v14 = vpack.c.bf16 %v234_v13, %v234_v13 }
 0x177   :  { %438 = vmatmul.mubr.bf16.vlgmr.msra.gmra.mrb[0].mxu1 %v235_v14 }
 0x24a   :  { %v338_v16 = vpop.f32.mrb[0].mxu1 }
 0x24b   :  { %v339_v17 = vadd.f32 %v374_v15, %v338_v16  ;;  %v439_v18 = vpop.f32.mrb[1].mxu1 }
 0x24c   :  { %v341_v19 = vpop.f32.mrb[2].mxu1 }
 0x24d   :  { %v344_v20 = vadd.f32 %v339_v17, %v643_v3  ;;  %v440_v21 = vpop.f32.mrb[3].mxu1 }
 0x24f   :  { %345 = vst [vmem:[#allocation8] sm:$0xff] %v344_v20 }
 0x250   :  { %546 = shalt.err (!%p543_p0)
}
 0x251   :  { %s547_s12 = scalar_lea.hbm %s695_s4, 128 }
 0x252   :  { %p548_p1 = scmp.ne.s32.totalorder %s695_s4, %s547_s12  ;;  %p551_p2 = scmp.lt.u32.totalorder %s547_s12, %s695_s4 }
 0x254   :  { %p553_p3 = pnand %p551_p2, %p548_p1 }
 0x256   :  { %556 = shalt.err (!%p553_p3)
}
 0x257   :  { %355 = dma.vmem_to_hbm [thread:$0]  %s353_s9, 128, %s695_s4, [#allocation4]  }
 0x258   :  { %561 = dma.done.wait [#allocation4], 128  }
 0x259   :  { %562 = vsyncadd [#allocation4], 4294967168 }
 0x25a   :  { %359 = vsyncpa [#allocation3], 1 }
 0x25b   :  { %360 = vsyncpa [#allocation6], 1 }
 0x25c   :  { %361 = vsyncpa [#allocation4], 1 }

</bundles_post_ra>
